<compile_context>
chip_gen: v6e
topology: v6e:2x2x1
jax: 0.10.0
libtpu: 0.0.40
codegen_flags: <defaults>
</compile_context>

<pallas_src>
import jax
import jax.numpy as jnp
from jax.experimental import pallas as pl
from jax.experimental.pallas import tpu as pltpu


def _yolo_loss_kernel(slab_ref, conf_ref, out_ref, acc_l, acc_c, acc_o):
    # grid = (n_splits, steps): leading axis "parallel" (megacore on v7x),
    # trailing axis is the in-split reduction over row tiles ("arbitrary").
    i = pl.program_id(1)

    @pl.when(i == 0)
    def _init():
        acc_l[...] = jnp.zeros_like(acc_l)
        acc_c[...] = jnp.zeros_like(acc_c)
        acc_o[...] = jnp.zeros_like(acc_o)

    # Lane-dense, feature-major tiles.  Cast to f32 in-kernel (HBM stays in the
    # caller's dtype, so bf16 models pay half the memory traffic).
    slab = slab_ref[...].astype(jnp.float32)      # (16, T)
    conf = conf_ref[...].astype(jnp.float32)      # (C,  T)

    loc_xy = slab[0:2, :]
    loc_wh = slab[2:4, :]
    t_xy = slab[4:6, :]
    t_wh = slab[6:8, :]
    obj = slab[8:9, :]                            # (1, T)
    labels = slab[9:10, :]                        # (1, T) matched labels (as float)
    valid = slab[10:11, :]                        # (1, T) 1.0 real row, 0.0 padded row

    pos = jnp.where(labels > 0.5, 1.0, 0.0) * valid          # positive anchors

    # ---- localization: MSE(sigmoid(xy), t_xy) + MSE(wh, t_wh), positives only ----
    d_xy = jax.nn.sigmoid(loc_xy) - t_xy
    d_wh = loc_wh - t_wh
    per_lane_l = (jnp.sum(d_xy * d_xy, axis=0, keepdims=True)
                  + jnp.sum(d_wh * d_wh, axis=0, keepdims=True))   # (1, T)
    acc_l[...] += pos * per_lane_l

    # ---- confidence: logsumexp(conf) - conf[label], all valid anchors ----
    m = jnp.max(conf, axis=0, keepdims=True)                       # (1, T)
    lse = jnp.log(jnp.sum(jnp.exp(conf - m), axis=0, keepdims=True)) + m
    row = jax.lax.broadcasted_iota(jnp.int32, conf.shape, 0).astype(jnp.float32)
    onehot = jnp.where(row == labels, 1.0, 0.0)    # exact: labels are small integers
    gathered = jnp.sum(conf * onehot, axis=0, keepdims=True)       # (1, T)
    acc_c[...] += valid * (lse - gathered)

    # ---- objectness: BCE-with-logits vs zeros == softplus(obj) ----
    softplus = jnp.maximum(obj, 0.0) + jnp.log1p(jnp.exp(-jnp.abs(obj)))
    acc_o[...] += valid * softplus

    # Deferred cross-lane reduce + one lane-dense store at the end of each split.
    @pl.when(i == pl.num_programs(1) - 1)
    def _finalize():
        tl = jnp.sum(acc_l[...]).reshape(1, 1, 1)
        tc = jnp.sum(acc_c[...]).reshape(1, 1, 1)
        to = jnp.sum(acc_o[...]).reshape(1, 1, 1)
        lane = jax.lax.broadcasted_iota(jnp.int32, out_ref.shape, 2)
        out_ref[...] = (jnp.where(lane == 0, tl, 0.0)
                        + jnp.where(lane == 1, tc, 0.0)
                        + jnp.where(lane == 2, to, 0.0))


def yolo_loss(loc_data, conf_data, obj_data, loc_t, conf_t, *, tile=2048, n_splits=2):
    """loc_data:(B,P,4)  conf_data:(B,P,C)  obj_data:(B,P,1)
       loc_t:(B,P,4)     conf_t:(B,P) int   ->  (loss_l, loss_c, loss_o) scalars."""
    B, P, _ = loc_data.shape
    C = conf_data.shape[-1]
    N = B * P
    dtype = loc_data.dtype

    # Tile along the lane (row) axis; shrink for small problems, round to 128.
    per_split = pl.cdiv(N, n_splits)
    tile_eff = max(128, min(int(tile), ((per_split + 127) // 128) * 128))
    steps = pl.cdiv(N, n_splits * tile_eff)
    n_pad = n_splits * steps * tile_eff

    # ---- feature-major packed slab: (16, N) ----
    loc2 = loc_data.reshape(N, 4).T.astype(dtype)     # rows 0..3
    loct2 = loc_t.reshape(N, 4).T.astype(dtype)       # rows 4..7
    obj2 = obj_data.reshape(1, N).astype(dtype)       # row 8
    lab2 = conf_t.reshape(1, N).astype(dtype)         # row 9 (labels as float, exact)
    valid = jnp.ones((1, N), dtype)                   # row 10 (tail mask)
    pad_rows = jnp.zeros((5, N), dtype)               # rows 11..15
    slab = jnp.concatenate([loc2, loct2, obj2, lab2, valid, pad_rows], axis=0)

    conf2 = conf_data.reshape(N, C).T                 # (C, N), keep original dtype

    pad = n_pad - N
    if pad:
        slab = jnp.pad(slab, ((0, 0), (0, pad)))      # padded cols: valid == 0
        conf2 = jnp.pad(conf2, ((0, 0), (0, pad)))

    out = pl.pallas_call(
        _yolo_loss_kernel,
        out_shape=jax.ShapeDtypeStruct((n_splits, 8, 128), jnp.float32),
        grid_spec=pltpu.PrefetchScalarGridSpec(
            num_scalar_prefetch=0,
            grid=(n_splits, steps),
            in_specs=[
                pl.BlockSpec((16, tile_eff), lambda c, i, s=steps: (0, c * s + i)),
                pl.BlockSpec((C, tile_eff), lambda c, i, s=steps: (0, c * s + i)),
            ],
            out_specs=pl.BlockSpec((1, 8, 128), lambda c, i: (c, 0, 0)),
            scratch_shapes=[pltpu.VMEM((1, tile_eff), jnp.float32)] * 3,
        ),
        compiler_params=pltpu.CompilerParams(
            dimension_semantics=("parallel", "arbitrary")),
    )(slab, conf2)

    loss_l = jnp.sum(out[:, 0, 0])
    loss_c = jnp.sum(out[:, 0, 1])
    loss_o = jnp.sum(out[:, 0, 2])
    return loss_l, loss_c, loss_o


def _reference(loc_data, conf_data, obj_data, loc_t, conf_t):
    C = conf_data.shape[-1]
    loc = loc_data.reshape(-1, 4).astype(jnp.float32)
    conf = conf_data.reshape(-1, C).astype(jnp.float32)
    obj = obj_data.reshape(-1, 1).astype(jnp.float32)
    loct = loc_t.reshape(-1, 4).astype(jnp.float32)
    labels = conf_t.reshape(-1)
    pos = (labels > 0).astype(jnp.float32)[:, None]
    loss_xy = jnp.sum(pos * (jax.nn.sigmoid(loc[:, 0:2]) - loct[:, 0:2]) ** 2)
    loss_wh = jnp.sum(pos * (loc[:, 2:4] - loct[:, 2:4]) ** 2)
    lse = jax.nn.logsumexp(conf, axis=-1)
    gathered = jnp.take_along_axis(conf, labels[:, None], axis=-1)[:, 0]
    loss_c = jnp.sum(lse - gathered)
    loss_o = jnp.sum(jax.nn.softplus(obj))
    return loss_xy + loss_wh, loss_c, loss_o


if __name__ == "__main__":
    key = jax.random.PRNGKey(0)
    # Small shapes; P deliberately NOT a multiple of 128 to exercise tail masking.
    B, P, C = 2, 120, 8
    k1, k2, k3, k4, k5 = jax.random.split(key, 5)

    loc_data = jax.random.normal(k1, (B, P, 4), jnp.float32)
    conf_data = jax.random.normal(k2, (B, P, C), jnp.float32)
    obj_data = jax.random.normal(k3, (B, P, 1), jnp.float32)
    loc_t = jax.random.normal(k4, (B, P, 4), jnp.float32)
    conf_t = jax.random.randint(k5, (B, P), 0, C, jnp.int32)   # 0 == background

    out = yolo_loss(loc_data, conf_data, obj_data, loc_t, conf_t)
    out = jax.block_until_ready(out)

    ref = _reference(loc_data, conf_data, obj_data, loc_t, conf_t)
    for a, b in zip(out, ref):
        assert jnp.allclose(a, b, rtol=1e-4, atol=1e-3), (a, b)

    print("KERNEL_OK")
</pallas_src>

<mosaic_0001>
module attributes {stable_mosaic.version = 11 : i64} {
  func.func @_yolo_loss_kernel(%arg0: i32, %arg1: i32, %arg2: memref<16x128xf32, #tpu.memory_space<vmem>>, %arg3: memref<8x128xf32, #tpu.memory_space<vmem>>, %arg4: memref<1x8x128xf32, #tpu.memory_space<vmem>>, %arg5: memref<1x128xf32, #tpu.memory_space<vmem>>, %arg6: memref<1x128xf32, #tpu.memory_space<vmem>>, %arg7: memref<1x128xf32, #tpu.memory_space<vmem>>) attributes {dimension_semantics = [#tpu.dimension_semantics<parallel>, #tpu.dimension_semantics<arbitrary>], iteration_bounds = array<i64: 2, 1>, scalar_prefetch = 0 : i64, scratch_operands = 3 : i64, tpu.core_type = #tpu.core_type<tc>, window_params = [{transform_indices = @transform_0, window_bounds = array<i64: 16, 128>}, {transform_indices = @transform_1, window_bounds = array<i64: 8, 128>}, {transform_indices = @transform_2, window_bounds = array<i64: 1, 8, 128>}]} {
    %c0_i32 = arith.constant 0 : i32
    %0 = arith.cmpi eq, %arg1, %c0_i32 : i32
    %1 = arith.extui %0 : i1 to i32
    %c0_i32_0 = arith.constant 0 : i32
    %2 = arith.cmpi ne, %1, %c0_i32_0 : i32
    scf.if %2 {
      %cst_30 = arith.constant 0.000000e+00 : f32
      %75 = vector.broadcast %cst_30 : f32 to vector<1x128xf32>
      %c0_31 = arith.constant 0 : index
      %c0_32 = arith.constant 0 : index
      %76 = vector.load %arg5[%c0_31, %c0_32] : memref<1x128xf32, #tpu.memory_space<vmem>>, vector<1x128xf32>
      tpu.vector_store %arg5[%c0_31, %c0_32], %75 {strides = array<i32>} : memref<1x128xf32, #tpu.memory_space<vmem>>, vector<1x128xf32>,
      %cst_33 = arith.constant 0.000000e+00 : f32
      %77 = vector.broadcast %cst_33 : f32 to vector<1x128xf32>
      %c0_34 = arith.constant 0 : index
      %c0_35 = arith.constant 0 : index
      %78 = vector.load %arg6[%c0_34, %c0_35] : memref<1x128xf32, #tpu.memory_space<vmem>>, vector<1x128xf32>
      tpu.vector_store %arg6[%c0_34, %c0_35], %77 {strides = array<i32>} : memref<1x128xf32, #tpu.memory_space<vmem>>, vector<1x128xf32>,
      %cst_36 = arith.constant 0.000000e+00 : f32
      %79 = vector.broadcast %cst_36 : f32 to vector<1x128xf32>
      %c0_37 = arith.constant 0 : index
      %c0_38 = arith.constant 0 : index
      %80 = vector.load %arg7[%c0_37, %c0_38] : memref<1x128xf32, #tpu.memory_space<vmem>>, vector<1x128xf32>
      tpu.vector_store %arg7[%c0_37, %c0_38], %79 {strides = array<i32>} : memref<1x128xf32, #tpu.memory_space<vmem>>, vector<1x128xf32>,
    } else {
    }
    %c0 = arith.constant 0 : index
    %c0_1 = arith.constant 0 : index
    %3 = vector.load %arg2[%c0, %c0_1] : memref<16x128xf32, #tpu.memory_space<vmem>>, vector<16x128xf32>
    %c0_2 = arith.constant 0 : index
    %c0_3 = arith.constant 0 : index
    %4 = vector.load %arg3[%c0_2, %c0_3] : memref<8x128xf32, #tpu.memory_space<vmem>>, vector<8x128xf32>
    %5 = vector.extract_strided_slice %3 {offsets = [0, 0], sizes = [2, 128], strides = [1, 1]} : vector<16x128xf32> to vector<2x128xf32>
    %6 = vector.extract_strided_slice %3 {offsets = [2, 0], sizes = [2, 128], strides = [1, 1]} : vector<16x128xf32> to vector<2x128xf32>
    %7 = vector.extract_strided_slice %3 {offsets = [4, 0], sizes = [2, 128], strides = [1, 1]} : vector<16x128xf32> to vector<2x128xf32>
    %8 = vector.extract_strided_slice %3 {offsets = [6, 0], sizes = [2, 128], strides = [1, 1]} : vector<16x128xf32> to vector<2x128xf32>
    %9 = vector.extract_strided_slice %3 {offsets = [8, 0], sizes = [1, 128], strides = [1, 1]} : vector<16x128xf32> to vector<1x128xf32>
    %10 = vector.extract_strided_slice %3 {offsets = [9, 0], sizes = [1, 128], strides = [1, 1]} : vector<16x128xf32> to vector<1x128xf32>
    %11 = vector.extract_strided_slice %3 {offsets = [10, 0], sizes = [1, 128], strides = [1, 1]} : vector<16x128xf32> to vector<1x128xf32>
    %cst = arith.constant 5.000000e-01 : f32
    %12 = vector.broadcast %cst : f32 to vector<1x128xf32>
    %13 = arith.cmpf ogt, %10, %12 : vector<1x128xf32>
    %cst_4 = arith.constant 1.000000e+00 : f32
    %cst_5 = arith.constant 0.000000e+00 : f32
    %14 = vector.broadcast %cst_4 : f32 to vector<1x128xf32>
    %15 = vector.broadcast %cst_5 : f32 to vector<1x128xf32>
    %16 = arith.select %13, %14, %15 : vector<1x128xi1>, vector<1x128xf32>
    %17 = arith.mulf %16, %11 : vector<1x128xf32>
    %18 = arith.negf %5 : vector<2x128xf32>
    %19 = math.exp %18 : vector<2x128xf32>
    %cst_6 = arith.constant 1.000000e+00 : f32
    %20 = vector.broadcast %cst_6 : f32 to vector<2x128xf32>
    %21 = arith.addf %20, %19 : vector<2x128xf32>
    %22 = arith.divf %20, %21 : vector<2x128xf32>
    %23 = arith.subf %22, %7 : vector<2x128xf32>
    %24 = arith.subf %6, %8 : vector<2x128xf32>
    %25 = arith.mulf %23, %23 : vector<2x128xf32>
    %cst_7 = arith.constant dense<0.000000e+00> : vector<128xf32>
    %26 = vector.multi_reduction <add>, %25, %cst_7 [0] : vector<2x128xf32> to vector<128xf32>
    %27 = vector.shape_cast %26 : vector<128xf32> to vector<1x128xf32>
    %28 = arith.mulf %24, %24 : vector<2x128xf32>
    %cst_8 = arith.constant dense<0.000000e+00> : vector<128xf32>
    %29 = vector.multi_reduction <add>, %28, %cst_8 [0] : vector<2x128xf32> to vector<128xf32>
    %30 = vector.shape_cast %29 : vector<128xf32> to vector<1x128xf32>
    %31 = arith.addf %27, %30 : vector<1x128xf32>
    %c0_9 = arith.constant 0 : index
    %c0_10 = arith.constant 0 : index
    %32 = vector.load %arg5[%c0_9, %c0_10] : memref<1x128xf32, #tpu.memory_space<vmem>>, vector<1x128xf32>
    %33 = arith.mulf %17, %31 : vector<1x128xf32>
    %34 = arith.addf %32, %33 : vector<1x128xf32>
    %c0_11 = arith.constant 0 : index
    %c0_12 = arith.constant 0 : index
    %35 = vector.load %arg5[%c0_11, %c0_12] : memref<1x128xf32, #tpu.memory_space<vmem>>, vector<1x128xf32>
    tpu.vector_store %arg5[%c0_11, %c0_12], %34 {strides = array<i32>} : memref<1x128xf32, #tpu.memory_space<vmem>>, vector<1x128xf32>,
    %cst_13 = arith.constant dense<0xFF800000> : vector<128xf32>
    %36 = vector.multi_reduction <maximumf>, %4, %cst_13 [0] : vector<8x128xf32> to vector<128xf32>
    %37 = vector.shape_cast %36 : vector<128xf32> to vector<1x128xf32>
    %38 = vector.broadcast %37 : vector<1x128xf32> to vector<8x128xf32>
    %39 = arith.subf %4, %38 : vector<8x128xf32>
    %40 = math.exp %39 : vector<8x128xf32>
    %cst_14 = arith.constant dense<0.000000e+00> : vector<128xf32>
    %41 = vector.multi_reduction <add>, %40, %cst_14 [0] : vector<8x128xf32> to vector<128xf32>
    %42 = vector.shape_cast %41 : vector<128xf32> to vector<1x128xf32>
    %43 = math.log %42 : vector<1x128xf32>
    %44 = arith.addf %43, %37 : vector<1x128xf32>
    %45 = tpu.iota {dimensions = array<i32: 0>} : vector<8x128xi32>
    %46 = arith.sitofp %45 : vector<8x128xi32> to vector<8x128xf32>
    %47 = vector.broadcast %10 : vector<1x128xf32> to vector<8x128xf32>
    %48 = arith.cmpf oeq, %46, %47 : vector<8x128xf32>
    %cst_15 = arith.constant 1.000000e+00 : f32
    %cst_16 = arith.constant 0.000000e+00 : f32
    %49 = vector.broadcast %cst_15 : f32 to vector<8x128xf32>
    %50 = vector.broadcast %cst_16 : f32 to vector<8x128xf32>
    %51 = arith.select %48, %49, %50 : vector<8x128xi1>, vector<8x128xf32>
    %52 = arith.mulf %4, %51 : vector<8x128xf32>
    %cst_17 = arith.constant dense<0.000000e+00> : vector<128xf32>
    %53 = vector.multi_reduction <add>, %52, %cst_17 [0] : vector<8x128xf32> to vector<128xf32>
    %54 = vector.shape_cast %53 : vector<128xf32> to vector<1x128xf32>
    %c0_18 = arith.constant 0 : index
    %c0_19 = arith.constant 0 : index
    %55 = vector.load %arg6[%c0_18, %c0_19] : memref<1x128xf32, #tpu.memory_space<vmem>>, vector<1x128xf32>
    %56 = arith.subf %44, %54 : vector<1x128xf32>
    %57 = arith.mulf %11, %56 : vector<1x128xf32>
    %58 = arith.addf %55, %57 : vector<1x128xf32>
    %c0_20 = arith.constant 0 : index
    %c0_21 = arith.constant 0 : index
    %59 = vector.load %arg6[%c0_20, %c0_21] : memref<1x128xf32, #tpu.memory_space<vmem>>, vector<1x128xf32>
    tpu.vector_store %arg6[%c0_20, %c0_21], %58 {strides = array<i32>} : memref<1x128xf32, #tpu.memory_space<vmem>>, vector<1x128xf32>,
    %cst_22 = arith.constant 0.000000e+00 : f32
    %60 = vector.broadcast %cst_22 : f32 to vector<1x128xf32>
    %61 = arith.maximumf %9, %60 : vector<1x128xf32>
    %62 = math.absf %9 : vector<1x128xf32>
    %cst_23 = arith.constant 0.000000e+00 : f32
    %63 = vector.broadcast %cst_23 : f32 to vector<1x128xf32>
    %64 = arith.subf %63, %62 : vector<1x128xf32>
    %65 = math.exp %64 : vector<1x128xf32>
    %66 = math.log1p %65 : vector<1x128xf32>
    %67 = arith.addf %61, %66 : vector<1x128xf32>
    %c0_24 = arith.constant 0 : index
    %c0_25 = arith.constant 0 : index
    %68 = vector.load %arg7[%c0_24, %c0_25] : memref<1x128xf32, #tpu.memory_space<vmem>>, vector<1x128xf32>
    %69 = arith.mulf %11, %67 : vector<1x128xf32>
    %70 = arith.addf %68, %69 : vector<1x128xf32>
    %c0_26 = arith.constant 0 : index
    %c0_27 = arith.constant 0 : index
    %71 = vector.load %arg7[%c0_26, %c0_27] : memref<1x128xf32, #tpu.memory_space<vmem>>, vector<1x128xf32>
    tpu.vector_store %arg7[%c0_26, %c0_27], %70 {strides = array<i32>} : memref<1x128xf32, #tpu.memory_space<vmem>>, vector<1x128xf32>,
    %c0_i32_28 = arith.constant 0 : i32
    %72 = arith.cmpi eq, %arg1, %c0_i32_28 : i32
    %73 = arith.extui %72 : i1 to i32
    %c0_i32_29 = arith.constant 0 : i32
    %74 = arith.cmpi ne, %73, %c0_i32_29 : i32
    scf.if %74 {
      %c0_30 = arith.constant 0 : index
      %c0_31 = arith.constant 0 : index
      %75 = vector.load %arg5[%c0_30, %c0_31] : memref<1x128xf32, #tpu.memory_space<vmem>>, vector<1x128xf32>
      %76 = vector.shape_cast %75 : vector<1x128xf32> to vector<1x1x128xf32>
      %cst_32 = arith.constant dense<0.000000e+00> : vector<1xf32>
      %77 = vector.multi_reduction <add>, %76, %cst_32 [1, 2] : vector<1x1x128xf32> to vector<1xf32>
      %78 = vector.shape_cast %77 : vector<1xf32> to vector<1x1x1xf32>
      %79 = vector.extract %78[0, 0, 0] : f32 from vector<1x1x1xf32>
      %80 = vector.broadcast %79 : f32 to vector<1x1x1xf32>
      %c0_33 = arith.constant 0 : index
      %c0_34 = arith.constant 0 : index
      %81 = vector.load %arg6[%c0_33, %c0_34] : memref<1x128xf32, #tpu.memory_space<vmem>>, vector<1x128xf32>
      %82 = vector.shape_cast %81 : vector<1x128xf32> to vector<1x1x128xf32>
      %cst_35 = arith.constant dense<0.000000e+00> : vector<1xf32>
      %83 = vector.multi_reduction <add>, %82, %cst_35 [1, 2] : vector<1x1x128xf32> to vector<1xf32>
      %84 = vector.shape_cast %83 : vector<1xf32> to vector<1x1x1xf32>
      %85 = vector.extract %84[0, 0, 0] : f32 from vector<1x1x1xf32>
      %86 = vector.broadcast %85 : f32 to vector<1x1x1xf32>
      %c0_36 = arith.constant 0 : index
      %c0_37 = arith.constant 0 : index
      %87 = vector.load %arg7[%c0_36, %c0_37] : memref<1x128xf32, #tpu.memory_space<vmem>>, vector<1x128xf32>
      %88 = vector.shape_cast %87 : vector<1x128xf32> to vector<1x1x128xf32>
      %cst_38 = arith.constant dense<0.000000e+00> : vector<1xf32>
      %89 = vector.multi_reduction <add>, %88, %cst_38 [1, 2] : vector<1x1x128xf32> to vector<1xf32>
      %90 = vector.shape_cast %89 : vector<1xf32> to vector<1x1x1xf32>
      %91 = vector.extract %90[0, 0, 0] : f32 from vector<1x1x1xf32>
      %92 = vector.broadcast %91 : f32 to vector<1x1x1xf32>
      %93 = tpu.iota {dimensions = array<i32: 2>} : vector<1x8x128xi32>
      %c0_i32_39 = arith.constant 0 : i32
      %94 = vector.broadcast %c0_i32_39 : i32 to vector<1x8x128xi32>
      %95 = arith.cmpi eq, %93, %94 : vector<1x8x128xi32>
      %cst_40 = arith.constant 0.000000e+00 : f32
      %96 = vector.shape_cast %80 : vector<1x1x1xf32> to vector<1x1x1xf32>
      %97 = vector.broadcast %96 : vector<1x1x1xf32> to vector<1x8x128xf32>
      %98 = vector.broadcast %cst_40 : f32 to vector<1x8x128xf32>
      %99 = arith.select %95, %97, %98 : vector<1x8x128xi1>, vector<1x8x128xf32>
      %c1_i32 = arith.constant 1 : i32
      %100 = vector.broadcast %c1_i32 : i32 to vector<1x8x128xi32>
      %101 = arith.cmpi eq, %93, %100 : vector<1x8x128xi32>
      %cst_41 = arith.constant 0.000000e+00 : f32
      %102 = vector.shape_cast %86 : vector<1x1x1xf32> to vector<1x1x1xf32>
      %103 = vector.broadcast %102 : vector<1x1x1xf32> to vector<1x8x128xf32>
      %104 = vector.broadcast %cst_41 : f32 to vector<1x8x128xf32>
      %105 = arith.select %101, %103, %104 : vector<1x8x128xi1>, vector<1x8x128xf32>
      %106 = arith.addf %99, %105 : vector<1x8x128xf32>
      %c2_i32 = arith.constant 2 : i32
      %107 = vector.broadcast %c2_i32 : i32 to vector<1x8x128xi32>
      %108 = arith.cmpi eq, %93, %107 : vector<1x8x128xi32>
      %cst_42 = arith.constant 0.000000e+00 : f32
      %109 = vector.shape_cast %92 : vector<1x1x1xf32> to vector<1x1x1xf32>
      %110 = vector.broadcast %109 : vector<1x1x1xf32> to vector<1x8x128xf32>
      %111 = vector.broadcast %cst_42 : f32 to vector<1x8x128xf32>
      %112 = arith.select %108, %110, %111 : vector<1x8x128xi1>, vector<1x8x128xf32>
      %113 = arith.addf %106, %112 : vector<1x8x128xf32>
      %c0_43 = arith.constant 0 : index
      %c0_44 = arith.constant 0 : index
      %c0_45 = arith.constant 0 : index
      %114 = vector.load %arg4[%c0_43, %c0_44, %c0_45] : memref<1x8x128xf32, #tpu.memory_space<vmem>>, vector<1x8x128xf32>
      tpu.vector_store %arg4[%c0_43, %c0_44, %c0_45], %113 {strides = array<i32>} : memref<1x8x128xf32, #tpu.memory_space<vmem>>, vector<1x8x128xf32>,
    } else {
    }
    return
  }
  func.func @transform_0(%arg0: i32, %arg1: i32) -> (i32, i32) {
    %c1_i32 = arith.constant 1 : i32
    %0 = arith.muli %arg0, %c1_i32 : i32
    %1 = arith.addi %0, %arg1 : i32
    %c0_i32 = arith.constant 0 : i32
    %c0_i32_0 = arith.constant 0 : i32
    return %c0_i32, %1 : i32, i32
  }
  func.func @transform_1(%arg0: i32, %arg1: i32) -> (i32, i32) {
    %c1_i32 = arith.constant 1 : i32
    %0 = arith.muli %arg0, %c1_i32 : i32
    %1 = arith.addi %0, %arg1 : i32
    %c0_i32 = arith.constant 0 : i32
    %c0_i32_0 = arith.constant 0 : i32
    return %c0_i32, %1 : i32, i32
  }
  func.func @transform_2(%arg0: i32, %arg1: i32) -> (i32, i32, i32) {
    %c0_i32 = arith.constant 0 : i32
    %c0_i32_0 = arith.constant 0 : i32
    %c0_i32_1 = arith.constant 0 : i32
    return %arg0, %c0_i32, %c0_i32_0 : i32, i32, i32
  }
}

</mosaic_0001>

<bundles_post_ra>
// kernel: tpu_custom_call.1
= control target key start
LH: loop header
LB: loop body
LE: loop exit
PB: predicated region body
PF: predicated region fallthrough
CT: control target
= control target key end

     0   :  { %s1014_s0 = inlined_call_operand.hbm [shape: f32[16,256], index: 0, kind: input, shape index: {}]   ;;  %s1015_s1 = inlined_call_operand.hbm [shape: f32[8,256], index: 1, kind: input, shape index: {}]   ;;  %s1016_s2 = inlined_call_operand.hbm [shape: f32[2,8,128], index: 2, kind: output, shape index: {}]  }
   0x1   :  { %1017 = sst [smem:[#allocation14_spill]] %s1014_s0 }
   0x2   :  { %7 = vsyncpa [#allocation6], 0 }
   0x3   :  { %9 = vsyncpa [#allocation6 + $0x1], 0 }
   0x4   :  { %10 = vsyncpa [#allocation9], 0 }
   0x5   :  { %12 = vsyncpa [#allocation9 + $0x1], 0 }
   0x6   :  { %13 = vsyncpa [#allocation7], 0 }
   0x7   :  { %15 = vsyncpa [#allocation7 + $0x1], 0  ;;  %s822_s9 = smov 0   ;;  %s824_s10 = smov 0  }
   0x8   :  { %s826_s11 = smov 0   ;;  %s828_s12 = smov 0  }
   0x9   :  { %s830_s13 = smov 0   ;;  %s832_s14 = smov 0  }
   0xa LB: > { %s550_s15 = sadd.s32 4294967295, %s797_s14   ;;  %s551_s16 = sadd.s32 4294967294, %s797_s14   ;;  %s797_s14 = sphi %s832_s14, %s21_s14   ;;  %s793_s13 = sphi %s830_s13, %s1030_s13   ;;  %s789_s12 = sphi %s828_s12, %s1029_s12   ;;  %s785_s11 = sphi %s826_s11, %s1028_s11   ;;  %s781_s10 = sphi %s824_s10, %s1027_s10   ;;  %s777_s9 = sphi %s822_s9, %s1026_s9  }
   0xb   : > { %s33_s17 = sadd.s32 1, %s793_s13  ;;  %s42_s18 = sadd.s32 1, %s785_s11 }
   0xc   : > { %p35_p0 = scmp.ge.s32.totalorder %s33_s17, 2  ;;  %p49_p1 = scmp.ne.s32.totalorder %s785_s11, %s781_s10 }
   0xd   : > { %p50_p2 = scmp.eq.s32.totalorder %s797_s14, 0  ;;  %p55_p3 = scmp.ne.s32.totalorder %s781_s10, %s777_s9 }
   0xe   : > { %s1032_s17 = smov (%p35_p0, %s33_s17), 0  ;;  %p56_p5 = scmp.eq.s32.totalorder %s550_s15, 0 }
   0xf   : > { %p863_p4 = por %p50_p2, %p49_p1  ;;  %s39_s20 = ssub.s32 %s793_s13, %s1032_s17 }
  0x10   : > { %p107_p6 = scmp.eq.s32.totalorder %s550_s15, 1  ;;  %p40_p7 = scmp.eq.s32.totalorder %s39_s20, 0 }
  0x11   : > { %p869_p8 = por %p56_p5, %p55_p3  ;;  %p113_p10 = scmp.eq.s32.totalorder %s551_s16, 1 }
  0x12   : > { %p873_p9 = por %p107_p6, %p49_p1  ;;  %p590_p13 = scmp.lt.s32.totalorder %s797_s14, 2 }
  0x13   : > { %s878_s23 = scalar_select %p40_p7, %s785_s11, %s42_s18  }
  0x14   : > { %p880_p11 = por %p113_p10, %p55_p3  ;;  %s887_s25 = sand.u32 1, %s785_s11  }
  0x15   : > { %s554_s26 = sshll.u32 %s887_s25, 4  ;;  %s555_s27 = sshll.u32 %s793_s13, 7 }
  0x16   : > { %s1022_s0 = sld [smem:[#allocation14_spill]]  ;;  %s137_s3 = scalar_lea.vmem [#allocation5], %s554_s26 }
  0x17   : > { %s144_s4 = sshll.u32 %s137_s3, 4  ;;  %p898_p0 = pnand %p590_p13, %p863_p4  ;;  %s145_s4 = int_to_ptr.vmem [resolvable:$true] %s144_s4 }
  0x18   : > { %s134_s6 = scalar_lea.sflag [#allocation6], %s887_s25  ;;  %s670_s7 = scalar_lea.vmem %s145_s4, 256 }
  0x19   : > { %p659_p1 = pneg %p898_p0  ;;  %p671_p2 = scmp.ne.s32.totalorder %s145_s4, %s670_s7 }
  0x1a   : > { %s799_s8 = smov [#allocation5]  }
  0x1b   : > { %p673_p3 = pnand %p671_p2, %p659_p1  ;;  %s675_s15 = sshll.u32 %s799_s8, 4  ;;  %s676_s15 = int_to_ptr.vmem [resolvable:$false] %s675_s15 }
  0x1c   : > { %s143_s30 = scalar_lea.hbm %s1022_s0, %s555_s27  ;;  %s677_s16 = scalar_lea.vmem %s676_s15, 512 }
  0x1d   : > { %p674_p5 = pneg %p673_p3  ;;  %p678_p6 = scmp.lt.s32.totalorder %s145_s4, %s676_s15 }
  0x1e   : > { %p679_p4 = scmp.lt.s32.totalorder %s677_s16, %s670_s7 }
  0x20   : > { %p680_p7 = por %p679_p4, %p678_p6 }
  0x22   : > { %p681_p10 = pnand %p680_p7, %p674_p5 }
  0x24   : > { %684 = shalt.err (!%p681_p10)
}
  0x25   : > { %s800_s18 = smov 256   ;;  %s801_s19 = smov 128  }
  0x26   : > { %s802_s20 = smov 8   ;;  %p558_p13 = scmp.ge.s32.totalorder %s797_s14, 1 }
  0x27   : > { %582 = dma.hbm_to_vmem [thread:$0]  (!%p898_p0), %s143_s30, 256, %s145_s4, %s134_s6, %s800_s18, %s801_s19, %s802_s20  }
  0x28   : > { %p171_p2 = scmp.lt.s32.totalorder %s797_s14, 3  ;;  %s556_s26 = sshll.u32 %s887_s25, 3 }
  0x29   : > { %s164_s7 = scalar_lea.hbm %s1015_s1, %s555_s27  ;;  %s158_s8 = scalar_lea.vmem [#allocation8], %s556_s26 }
  0x2a   : > { %p913_p3 = pnand %p558_p13, %p171_p2  ;;  %s166_s15 = sshll.u32 %s158_s8, 4  ;;  %s167_s15 = int_to_ptr.vmem [resolvable:$true] %s166_s15 }
  0x2b   : > { %s155_s16 = scalar_lea.sflag [#allocation9], %s887_s25  ;;  %s698_s0 = scalar_lea.vmem %s167_s15, 128 }
  0x2c   : > { %p699_p5 = scmp.ne.s32.totalorder %s167_s15, %s698_s0  ;;  %s803_s30 = smov [#allocation8]  }
  0x2d   : > { %s703_s4 = sshll.u32 %s803_s30, 4  ;;  %s704_s4 = int_to_ptr.vmem [resolvable:$false] %s703_s4 }
  0x2e   : > { %p701_p6 = pnand %p699_p5, %p659_p1  ;;  %s705_s6 = scalar_lea.vmem %s704_s4, 256 }
  0x2f   : > { %p706_p7 = scmp.lt.s32.totalorder %s167_s15, %s704_s4  ;;  %p707_p10 = scmp.lt.s32.totalorder %s705_s6, %s698_s0 }
  0x30   : > { %p702_p4 = pneg %p701_p6 }
  0x31   : > { %p708_p13 = por %p707_p10, %p706_p7 }
  0x33   : > { %p709_p2 = pnand %p708_p13, %p702_p4 }
  0x35   : > { %712 = shalt.err (!%p709_p2)
}
  0x36   : > { %585 = dma.hbm_to_vmem [thread:$0]  (!%p898_p0), %s164_s7, 128, %s167_s15, %s155_s16  }
  0x37   : > { %175 = sbr.rel (%p913_p3) target bundleno = 369 (0x171), region = 28  ;;  %s931_s25 = sand.u32 (!%p913_p3), 1, %s781_s10  }
  0x38   : > { %s559_s27 = sshll.u32 (!%p913_p3), %s931_s25, 4  ;;  %s178_s18 = scalar_lea.sflag (!%p913_p3), [#allocation6], %s931_s25 }
  0x39   : > { %s181_s19 = scalar_lea.vmem (!%p913_p3), [#allocation5], %s559_s27 }
  0x3c   : > { %764 = dma.done.wait (%p869_p8), %s178_s18, 256  }
  0x3d   : > { %766 = vsyncadd (%p869_p8), %s178_s18, 4294967040  ;;  %s560_s0 = sshll.u32 %s931_s25, 3  ;;  %s187_s5 = scalar_lea.sflag [#allocation9], %s931_s25 }
  0x3e   : > { %s190_s20 = scalar_lea.vmem [#allocation8], %s560_s0 }
  0x3f   : > { %768 = dma.done.wait (%p869_p8), %s187_s5, 128  }
  0x40   : > { %770 = vsyncadd (%p869_p8), %s187_s5, 4294967168  ;;  %v804_v0 = vmov 0.0   ;;  %v225_v1 = vld [vmem:[%s181_s19] sm:$0xff]  ;;  %v950_v2 = vld [vmem:[%s181_s19 + $0x8] sm:$0xff]  ;;  %v272_v16 = vlaneseq  ;;  %vm246_vm0 = vcmask 1041408   ;;  %vm386_vm4 = vcmask 1040384  }
  0x41   : > { %222 = vst [vmem:[#allocation2] sm:$0x1] %v804_v0  ;;  %223 = vst [vmem:[#allocation3] sm:$0x1] %v804_v0  ;;  %v227_v3 = vld [vmem:[%s190_s20] sm:$0xff]  ;;  %v241_v10 = vrot.slane %v225_v1, 4 }
  0x42   : > { %224 = vst [vmem:[#allocation4] sm:$0x1] %v804_v0  ;;  %v562_v4 = vmul.f32 -1.442695, %v225_v1  ;;  %v344_v5 = vand.u32 2147483647, %v950_v2 }
  0x43   : > { %v287_v6 = vrot.slane %v227_v3, 4  ;;  %v244_v13 = vsub.f32 %v225_v1, %v241_v10  ;;  %v273_v22 = vshrl.u32 %v272_v16, 7  ;;  %v805_v47 = vmov 1966171168   ;;  %s564_s29 = sshll.u32 %s789_s12, 7  ;;  %s215_s3 = scalar_lea.vmem [#allocation10], %s560_s0 }
  0x44   : > { %645 = vpow2.f32 %v562_v4  ;;  %v345_v7 = vsub.f32 0.0, %v344_v5  ;;  %v270_v48 = vunpack.c.l.s4 %v805_v47  ;;  %v343_v49 = vmax.f32 %v950_v2, 0.0  ;;  %s447_s7 = sshll.u32 %s215_s3, 4  ;;  %s445_s16 = scalar_lea.hbm %s1016_s2, %s564_s29  ;;  %s448_s7 = int_to_ptr.vmem [resolvable:$true] %s447_s7 }
  0x45   : > { %v288_v8 = vmax.f32 %v227_v3, %v287_v6  ;;  %v254_v17 = vmul.f32 %v244_v13, %v244_v13  ;;  %v310_v25 = vsub.s32 1, %v273_v22  ;;  %v307_v29 = vcvt.s32.f32 %v273_v22  ;;  %s434_s30 = scalar_lea.sflag [#allocation7], %s931_s25  ;;  %s713_s4 = scalar_lea.vmem %s448_s7, 128 }
  0x46   : > { %v346_v9 = vmul.f32 1.442695, %v345_v7  ;;  %v271_v58 = vunpack.c.0.s8 %v270_v48  ;;  %vm228_vm3 = vcmp.gt.f32.partialorder %v950_v2, 0.5  ;;  %v231_v1 = vrot.slane %v950_v2, 1  ;;  %p714_p8 = scmp.ne.s32.totalorder %s448_s7, %s713_s4  ;;  %s806_s6 = smov [#allocation10]  }
  0x47   : > { %v289_v11 = vrot.slane %v288_v8, 2  ;;  %v256_v23 = vrot.slane %v254_v17, 2  ;;  %v311_v30 = vrot.slane %v950_v2, %v310_v25  ;;  %v229_v6 = vsel %vm228_vm3, 1.0, %v804_v0  ;;  %s717_s12 = sshll.u32 %s806_s6, 4  ;;  %s718_s12 = int_to_ptr.vmem [resolvable:$false] %s717_s12 }
  0x48   : > { %647 = vpow2.f32 %v346_v9  ;;  %v274_v7 = vsub.s32 %v271_v58, %v273_v22  ;;  %p715_p0 = pnand %p714_p8, %p873_p9  ;;  %s719_s27 = scalar_lea.vmem %s718_s12, 256 }
  0x49   : > { %v290_v12 = vmax.f32 %v288_v8, %v289_v11  ;;  %v258_v27 = vsel %vm246_vm0, %v256_v23, 0.0  ;;  %vm312_vm1 = vcmp.eq.f32.partialorder %v307_v29, %v311_v30  ;;  %p720_p3 = scmp.lt.s32.totalorder %s448_s7, %s718_s12  ;;  %p721_p5 = scmp.lt.s32.totalorder %s719_s27, %s713_s4 }
  0x4a   : > { %v259_v28 = vrot.slane %v258_v27, 4  ;;  %v313_v37 = vsel %vm312_vm1, 1.0, %v804_v0  ;;  %p716_p1 = pneg %p715_p0 }
  0x4b   : > { %v291_v14 = vrot.slane %v290_v12, 1  ;;  %v314_v42 = vmul.f32 %v313_v37, %v227_v3  ;;  %p722_p6 = por %p721_p5, %p720_p3 }
  0x4c   : > { %v260_v32 = vadd.f32 %v259_v28, %v258_v27 }
  0x4d   : > { %v953_v15 = vmax.f32 %v290_v12, %v291_v14  ;;  %v315_v55 = vrot.slane %v314_v42, 4  ;;  %v233_v12 = vmul.f32 %v231_v1, %v229_v6  ;;  %p723_p4 = pnand %p722_p6, %p716_p1 }
  0x4e   : > { %v261_v39 = vrot.slane %v260_v32, 2 }
  0x4f   : > { %v293_v18 = vsub.f32 %v227_v3, %v953_v15  ;;  %v316_v4 = vadd.f32 %v315_v55, %v314_v42 }
  0x50   : > { %v262_v51 = vadd.f32 %v261_v39, %v260_v32 }
  0x51   : > { %v646_v19 = vpop.eup %645  ;;  %v294_v21 = vmul.f32 1.442695, %v293_v18  ;;  %v317_v14 = vrot.slane %v316_v4, 2 }
  0x52   : > { %v237_v20 = vadd.f32 1.0, %v646_v19  ;;  %v263_v61 = vrot.slane %v262_v51, 1  ;;  %v358_v19 = vld [vmem:[#allocation4] sm:$0x1] }
  0x53   : > { %v318_v23 = vadd.f32 %v317_v14, %v316_v4 }
  0x54   : > { %649 = vrcp.f32 %v237_v20 }
  0x55   : > { %651 = vpow2.f32 %v294_v21  ;;  %v648_v24 = vpop.eup %647  ;;  %v319_v22 = vrot.slane %v318_v23, 1 }
  0x56   : > { %v348_v26 = vadd.f32 1.0, %v648_v24  ;;  %v351_v31 = vmul.f32 -0.5, %v648_v24  ;;  %v354_v38 = vand.u32 2147483647, %v648_v24 }
  0x58   : > { %653 = vlog2.f32 %v348_v26  ;;  %v352_v34 = vadd.f32 1.0, %v351_v31  ;;  %vm355_vm2 = vcmp.lt.f32.partialorder %v354_v38, 0.0004427343  ;;  %v266_v26 = vld [vmem:[#allocation2] sm:$0x1]  ;;  %v320_v31 = vadd.f32 %v319_v22, %v318_v23 }
  0x5a   : > { %v353_v43 = vmul.f32 %v648_v24, %v352_v34 }
  0x61   : > { %v650_v33 = vpop.eup %649 }
  0x62   : > { %v652_v35 = vpop.eup %651  ;;  %v243_v36 = vsub.f32 %v650_v33, %v241_v10  ;;  %v264_v10 = vadd.f32 %v263_v61, %v262_v51 }
  0x63   : > { %v296_v40 = vrot.slane %v652_v35, 4 }
  0x64   : > { %v245_v41 = vmul.f32 %v243_v36, %v243_v36 }
  0x65   : > { %v297_v44 = vadd.f32 %v652_v35, %v296_v40  ;;  %v654_v45 = vpop.eup %653 }
  0x66   : > { %v247_v46 = vsel %vm246_vm0, %v245_v41, 0.0  ;;  %v350_v52 = vmul.f32 0.6931472, %v654_v45  ;;  %v321_v41 = vld [vmem:[#allocation3] sm:$0x1] }
  0x67   : > { %v248_v50 = vrot.slane %v247_v46, 4  ;;  %v298_v53 = vrot.slane %v297_v44, 2 }
  0x68   : > { %v356_v56 = vsel %vm355_vm2, %v353_v43, %v350_v52 }
  0x69   : > { %v249_v54 = vadd.f32 %v248_v50, %v247_v46  ;;  %v299_v57 = vadd.f32 %v298_v53, %v297_v44  ;;  %v357_v59 = vadd.f32 %v356_v56, %v343_v49 }
  0x6b   : > { %v250_v60 = vrot.slane %v249_v54, 2  ;;  %v300_v62 = vrot.slane %v299_v57, 1  ;;  %v360_v63 = vrot.slane %v357_v59, 6 }
  0x6d   : > { %v251_v3 = vadd.f32 %v250_v60, %v249_v54  ;;  %v301_v5 = vadd.f32 %v300_v62, %v299_v57  ;;  %v362_v8 = vmul.f32 %v360_v63, %v950_v2 }
  0x6f   : > { %v252_v9 = vrot.slane %v251_v3, 1  ;;  %655 = vlog2.f32 %v301_v5  ;;  %v370_v11 = vrot.slane %v362_v8, %v274_v7 }
  0x71   : > { %v253_v13 = vadd.f32 %v252_v9, %v251_v3  ;;  %v377_v17 = vrot.slane %v370_v11, %v274_v7  ;;  %v420_v3 = vand.u32 127, %v272_v16 }
  0x73   : > { %v265_v18 = vadd.f32 %v264_v10, %v253_v13  ;;  %v378_v20 = vcombine.high %v377_v17, %v377_v17  ;;  %vm421_vm5 = vcmp.eq.s32.totalorder %v420_v3, 0  ;;  %vm424_vm6 = vcmp.eq.s32.totalorder %v420_v3, 1 }
  0x74   : > { %vm428_vm7 = vcmp.eq.s32.totalorder %v420_v3, 2 }
  0x75   : > { %v267_v21 = vmul.f32 %v265_v18, %v233_v12  ;;  %v380_v24 = vadd.f32 %v378_v20, %v358_v19 }
  0x77   : > { %v275_v25 = vrot.slane %v267_v21, %v274_v7  ;;  %381 = vst [vmem:[#allocation4] sm:$0x1] %v380_v24 }
  0x79   : > { %v276_v0 = vcombine.high %v275_v25, %v275_v25 }
  0x7b   : > { %v283_v27 = vrot.slane %v276_v0, %v274_v7 }
  0x7c   : > { %v656_v28 = vpop.eup %655 }
  0x7d   : > { %v285_v29 = vadd.f32 %v283_v27, %v266_v26  ;;  %v303_v30 = vmul.f32 0.6931472, %v656_v28 }
  0x7e   : > { %v408_v32 = vld [vmem:[#allocation4] sm:$0x1] }
  0x7f   : > { %286 = vst [vmem:[#allocation2] sm:$0x1] %v285_v29  ;;  %v304_v33 = vadd.f32 %v303_v30, %v953_v15  ;;  %v409_v34 = vsel %vm386_vm4, %v408_v32, 0.0 }
  0x80   : > { %410 = vadd.xlane.f32.xlu1 %v409_v34 }
  0x81   : > { %v322_v35 = vsub.f32 %v304_v33, %v320_v31 }
  0x83   : > { %v323_v36 = vmul.f32 %v322_v35, %v950_v2 }
  0x85   : > { %v331_v37 = vrot.slane %v323_v36, %v274_v7 }
  0x86   : > { %v385_v38 = vld [vmem:[#allocation2] sm:$0x1] }
  0x87   : > { %v387_v39 = vsel %vm386_vm4, %v385_v38, 0.0  ;;  %v338_v40 = vrot.slane %v331_v37, %v274_v7 }
  0x88   : > { %388 = vadd.xlane.f32.xlu0 %v387_v39 }
  0x89   : > { %v339_v42 = vcombine.high %v338_v40, %v338_v40 }
  0x8b   : > { %v341_v43 = vadd.f32 %v339_v42, %v321_v41 }
  0x8d   : > { %342 = vst [vmem:[#allocation3] sm:$0x1] %v341_v43 }
  0x94   : > { %v397_v44 = vld [vmem:[#allocation3] sm:$0x1] }
  0x95   : > { %v398_v45 = vsel %vm386_vm4, %v397_v44, 0.0 }
  0x96   : > { %399 = vadd.xlane.f32.xlu0 %v398_v45 }
 0x109   : > { %v411_v48 = vpop.xlane.xlu1 %410 }
 0x10a   : > { %v412_v2 = vrot.slane %v411_v48, 4 }
 0x10c   : > { %v413_v52 = vadd.f32 %v412_v2, %v411_v48 }
 0x10e   : > { %v414_v54 = vrot.slane %v413_v52, 2 }
 0x110   : > { %v415_v58 = vadd.f32 %v414_v54, %v413_v52 }
 0x111   : > { %v389_v15 = vpop.xlane.xlu0 %388 }
 0x112   : > { %v390_v46 = vrot.slane %v389_v15, 4  ;;  %v416_v61 = vrot.slane %v415_v58, 1 }
 0x114   : > { %v391_v47 = vadd.f32 %v390_v46, %v389_v15  ;;  %v417_v1 = vadd.f32 %v416_v61, %v415_v58 }
 0x116   : > { %v392_v49 = vrot.slane %v391_v47, 2 }
 0x118   : > { %v393_v50 = vadd.f32 %v392_v49, %v391_v47 }
 0x11a   : > { %v394_v51 = vrot.slane %v393_v50, 1 }
 0x11c   : > { %v395_v53 = vadd.f32 %v394_v51, %v393_v50 }
 0x11e   : > { %567 = vpush %v395_v53 }
 0x11f   : > { %v400_v55 = vpop.xlane.xlu0 %399 }
 0x120   : > { %v401_v56 = vrot.slane %v400_v55, 4 }
 0x122   : > { %v402_v57 = vadd.f32 %v401_v56, %v400_v55 }
 0x124   : > { %v403_v59 = vrot.slane %v402_v57, 2 }
 0x126   : > { %v404_v60 = vadd.f32 %v403_v59, %v402_v57 }
 0x128   : > { %v405_v62 = vrot.slane %v404_v60, 1 }
 0x12a   : > { %v406_v63 = vadd.f32 %v405_v62, %v404_v60 }
 0x12c   : > { %569 = vpush %v406_v63 }
 0x12d   : > { %571 = vpush %v417_v1 }
 0x14f   : > { %s568_s21 = spop %567 }
 0x150   : > { %v422_v4 = vstv %s568_s21 }
 0x151   : > { %v423_v6 = vsel %vm421_vm5, %v422_v4, 0.0 }
 0x15d   : > { %s570_s26 = spop %569 }
 0x15e   : > { %v425_v5 = vstv %s570_s26  ;;  %s572_s28 = spop %571 }
 0x15f   : > { %v426_v7 = vsel %vm424_vm6, %v425_v5, 0.0  ;;  %v429_v8 = vstv %s572_s28 }
 0x160   : > { %v427_v9 = vadd.f32 %v426_v7, %v423_v6  ;;  %v430_v10 = vsel %vm428_vm7, %v429_v8, 0.0 }
 0x162   : > { %v431_v16 = vadd.f32 %v430_v10, %v427_v9 }
 0x164   : > { %432 = vst [vmem:[%s215_s3] sm:$0xff] %v431_v16 }
 0x165   : > { %726 = shalt.err (!%p723_p4)
}
 0x166   : > { %s727_s18 = scalar_lea.hbm %s445_s16, 128  ;;  %s731_s0 = scalar_lea.hbm %s1016_s2, 256 }
 0x167   : > { %p728_p7 = scmp.ne.s32.totalorder %s445_s16, %s727_s18  ;;  %p732_p2 = scmp.lt.s32.totalorder %s445_s16, %s1016_s2 }
 0x168   : > { %p733_p8 = scmp.lt.s32.totalorder %s731_s0, %s727_s18 }
 0x169   : > { %p729_p10 = pnand %p728_p7, %p873_p9 }
 0x16a   : > { %p734_p0 = por %p733_p8, %p732_p2 }
 0x16b   : > { %p730_p13 = pneg %p729_p10 }
 0x16d   : > { %p735_p12 = pnand %p734_p0, %p730_p13 }
 0x16f   : > { %738 = shalt.err (!%p735_p12)
}
 0x170   : > { %577 = dma.vmem_to_hbm [thread:$0]  (%p873_p9), %s448_s7, 128, %s445_s16, %s434_s30  }
 0x171 PF: > { %s459_s21 = sand.u32 1, %s777_s9   ;;  %p1025_p1 = scmp.ge.s32.totalorder %s797_s14, 2 }
 0x172   : > { %s460_s26 = scalar_lea.sflag [#allocation7], %s459_s21 }
 0x173   : > { %p587_p3 = pnand %p1025_p1, %p880_p11 }
 0x175   : > { %p588_p5 = pneg %p587_p3 }
 0x177   : > { %772 = dma.done.wait (%p588_p5), %s460_s26, 128  }
 0x178   : > { %774 = vsyncadd (%p588_p5), %s460_s26, 4294967168  ;;  %s21_s14 = sadd.s32 1, %s797_s14   ;;  %s1026_s9 = smov %s781_s10 }
 0x179   : > { %p18_p6 = scmp.ge.s32.totalorder %s21_s14, 4   ;;  %s1027_s10 = smov %s785_s11 }
 0x17a   : > { %s1028_s11 = smov %s878_s23  ;;  %s1029_s12 = smov %s793_s13 }
 0x17b   : > { %s1030_s13 = smov %s1032_s17  ;;  %20 = sbr.rel (!%p18_p6) target bundleno = 10 (0xa), region = 94 }
 0x180   :  { %465 = vsyncpa [#allocation6], 1 }
 0x181   :  { %467 = vsyncpa [#allocation6 + $0x1], 1 }
 0x182   :  { %468 = vsyncpa [#allocation9], 1 }
 0x183   :  { %470 = vsyncpa [#allocation9 + $0x1], 1 }
 0x184   :  { %471 = vsyncpa [#allocation7], 1 }
 0x185   :  { %473 = vsyncpa [#allocation7 + $0x1], 1 }

</bundles_post_ra>
